<compile_context>
chip_gen: v7x
topology: tpu7x:2x2x1
jax: 0.10.0
libtpu: 0.0.40
codegen_flags: <defaults>
</compile_context>

<pallas_src>
import functools

import jax
import jax.numpy as jnp
from jax.experimental import pallas as pl
from jax.experimental.pallas import tpu as pltpu


# ----------------------------- Pallas kernel ---------------------------------
def char_cnn_highway_kernel(x_ref, cwp_ref, cb_ref, whw_ref, bhw_ref, o_ref, *,
                            kernel_size, e_pad, c_pad):
    """x_ref:   (TILE_N, W*e_pad)       embedded chars, channels-last flattened, bf16
       cwp_ref: ((K+1)*e_pad, 2*c_pad)  tap-paired conv weights, bf16
       cb_ref:  (1, c_pad)              conv bias, f32
       whw_ref: (c_pad, 2*c_pad)        fused highway [proj | gate] weights (in, out), bf16
       bhw_ref: (1, 2*c_pad)            fused highway [proj | gate] biases, f32
       o_ref:   (TILE_N, c_pad)         word embeddings (pre-dropout), f32"""
    K = kernel_size
    W = x_ref.shape[1] // e_pad
    T = W - K + 1                      # conv output positions (>= 1, checked in wrapper)
    span = K * e_pad                   # single-step contraction depth
    span2 = (K + 1) * e_pad            # paired-step contraction depth
    n_pairs = T // 2

    # ---- Conv1d (tap-paired) + max over time.  Bias/ReLU hoisted out of the loop. ----
    if n_pairs > 0:
        cwp = cwp_ref[...]             # resident paired weights (bf16)
        r = jnp.dot(x_ref[:, 0:span2], cwp, preferred_element_type=jnp.float32)
        maxv = jnp.maximum(r[:, :c_pad], r[:, c_pad:])
        for p in range(1, n_pairs):
            off = 2 * p * e_pad        # even t -> window start is a multiple of 128 lanes
            r = jnp.dot(x_ref[:, off:off + span2], cwp,
                        preferred_element_type=jnp.float32)
            maxv = jnp.maximum(maxv, jnp.maximum(r[:, :c_pad], r[:, c_pad:]))
        if T % 2 == 1:                 # unpaired last step; t = T-1 is even -> aligned
            off = (T - 1) * e_pad
            r = jnp.dot(x_ref[:, off:off + span], cwp_ref[0:span, 0:c_pad],
                        preferred_element_type=jnp.float32)
            maxv = jnp.maximum(maxv, r)
    else:                              # T == 1
        maxv = jnp.dot(x_ref[:, 0:span], cwp_ref[0:span, 0:c_pad],
                       preferred_element_type=jnp.float32)

    pooled = jnp.maximum(maxv + cb_ref[...], 0.0)          # relu(max_t + bias), f32

    # ---- Highway: one fused (proj|gate) matmul; combine as x + g*(p - x). ----
    hw = jnp.dot(pooled.astype(jnp.bfloat16), whw_ref[...],
                 preferred_element_type=jnp.float32) + bhw_ref[...]
    x_proj = jnp.maximum(hw[:, :c_pad], 0.0)
    x_gate = jax.nn.sigmoid(hw[:, c_pad:])

    o_ref[...] = pooled + x_gate * (x_proj - pooled)


# ------------------------------- wrapper --------------------------------------
def _round_up(v, m):
    return ((v + m - 1) // m) * m


def model_embeddings_forward(inp, params, *, embed_size):
    """inp: (sentence_length, batch_size, max_word_length) int32 char indices."""
    L, B, W = inp.shape
    table = params["char_emb_pad_bf16"]                    # (V, e_pad) bf16 (padded cols = 0)
    e_pad = table.shape[1]
    cw_pair = params["conv_w_pair"]                        # ((K+1)*e_pad, 2*c_pad) bf16
    c_pad = cw_pair.shape[1] // 2

    K = embed_size                                         # module ties kernel_size to embed_size
    T = W - K + 1
    if T < 1:
        raise ValueError(f"max_word_length={W} must be >= kernel_size={K}")

    N = L * B

    # Tile the word dimension; keep >= 2 grid steps where possible (v7x has 2 TCs).
    if N >= 1024:
        TILE_N = 512
    elif N > 32:
        TILE_N = _round_up(pl.cdiv(N, 2), 16)
    else:
        TILE_N = _round_up(max(N, 1), 16)
    N_pad = _round_up(N, TILE_N)

    # Pad the cheap int32 indices (not the 32x larger bf16 activation) so the embedding
    # gather emits the padded, flattened channels-last layout directly (one HBM pass).
    idx = inp.reshape(N, W)
    if N_pad != N:
        idx = jnp.pad(idx, ((0, N_pad - N), (0, 0)))       # pad rows -> char 0 (zero row)
    x = jnp.take(table, idx.reshape(-1), axis=0).reshape(N_pad, W * e_pad)

    grid = (N_pad // TILE_N,)

    out = pl.pallas_call(
        functools.partial(char_cnn_highway_kernel,
                          kernel_size=K, e_pad=e_pad, c_pad=c_pad),
        out_shape=jax.ShapeDtypeStruct((N_pad, c_pad), jnp.float32),
        grid_spec=pltpu.PrefetchScalarGridSpec(
            num_scalar_prefetch=0,
            grid=grid,
            in_specs=[
                pl.BlockSpec((TILE_N, W * e_pad), lambda i: (i, 0)),           # streamed
                pl.BlockSpec(((K + 1) * e_pad, 2 * c_pad), lambda i: (0, 0)),  # resident
                pl.BlockSpec((1, c_pad), lambda i: (0, 0)),
                pl.BlockSpec((c_pad, 2 * c_pad), lambda i: (0, 0)),
                pl.BlockSpec((1, 2 * c_pad), lambda i: (0, 0)),
            ],
            out_specs=pl.BlockSpec((TILE_N, c_pad), lambda i: (i, 0)),
        ),
        compiler_params=pltpu.CompilerParams(
            dimension_semantics=("parallel",),
        ),
    )(x, cw_pair, params["conv_b_pad"], params["w_hw_pad"], params["b_hw_pad"])

    out = out[:N, :embed_size]
    # TODO(synk): nn.Dropout(0.3) is stochastic at train time; identity here (eval mode).
    return out.reshape(L, B, embed_size)


# ----------------------------- reference (pure JAX, f32) -----------------------
def reference_forward(inp, params, *, embed_size):
    L, B, W = inp.shape
    emb_table = params["char_emb"]                         # (V, 50) f32
    e_char = emb_table.shape[1]
    x = jnp.take(emb_table, inp.reshape(-1), axis=0).reshape(L * B, W, e_char)

    K = embed_size
    T = W - K + 1
    cw = params["conv_w_oik"]                              # (C_out, C_in, K) torch layout
    cb = params["conv_b"]
    convs = []
    for t in range(T):
        patch = x[:, t:t + K, :]                           # (N, K, C_in)
        convs.append(jnp.einsum("njc,ocj->no", patch, cw) + cb)
    conv = jnp.stack(convs, axis=-1)                       # (N, C_out, T)
    pooled = jnp.max(jax.nn.relu(conv), axis=-1)           # (N, C_out)

    x_proj = jax.nn.relu(pooled @ params["w_proj_io"] + params["b_proj"])
    x_gate = jax.nn.sigmoid(pooled @ params["w_gate_io"] + params["b_gate"])
    hw = x_gate * x_proj + (1.0 - x_gate) * pooled
    return hw.reshape(L, B, embed_size)


# ------------------------------- parameters ------------------------------------
def init_params(key, *, vocab_size, embed_size, e_char=50, pad_idx=0):
    e_pad = 64                                             # pad char-embedding dim 50 -> 64
    c_pad = ((embed_size + 127) // 128) * 128              # lane-dense output channels
    K = embed_size

    k = jax.random.split(key, 6)
    char_emb = 0.1 * jax.random.normal(k[0], (vocab_size, e_char), jnp.float32)
    char_emb = char_emb.at[pad_idx].set(0.0)               # padding_idx row is zero

    conv_w = 0.1 * jax.random.normal(k[1], (embed_size, e_char, K), jnp.float32)
    conv_b = 0.1 * jax.random.normal(k[2], (embed_size,), jnp.float32)

    w_proj = 0.1 * jax.random.normal(k[3], (embed_size, embed_size), jnp.float32)  # (out, in)
    b_proj = 0.1 * jax.random.normal(k[4], (embed_size,), jnp.float32)
    w_gate = 0.1 * jax.random.normal(k[5], (embed_size, embed_size), jnp.float32)
    b_gate = jnp.zeros((embed_size,), jnp.float32)

    # ---- kernel layouts: padded / flattened / tap-paired / fused / bf16 ----
    char_pad = jnp.pad(char_emb, ((0, 0), (0, e_pad - e_char))).astype(jnp.bfloat16)

    # (C_out, C_in, K) -> (K, C_in, C_out) -> pad to (K, e_pad, c_pad) -> flatten (K*e_pad, c_pad)
    cw_kio = jnp.transpose(conv_w, (2, 1, 0))
    cw_kio = jnp.pad(cw_kio, ((0, 0), (0, e_pad - e_char), (0, c_pad - embed_size)))
    cw_flat = cw_kio.reshape(K * e_pad, c_pad)

    # Tap-paired weight: column block 0 computes conv at t, block 1 at t+1
    # (same weights shifted down by one char position = e_pad rows).
    cw_pair = jnp.zeros(((K + 1) * e_pad, 2 * c_pad), jnp.float32)
    cw_pair = cw_pair.at[0:K * e_pad, 0:c_pad].set(cw_flat)
    cw_pair = cw_pair.at[e_pad:(K + 1) * e_pad, c_pad:2 * c_pad].set(cw_flat)
    cw_pair = cw_pair.astype(jnp.bfloat16)

    def pad_vec(v):
        return jnp.pad(v, (0, c_pad - embed_size)).reshape(1, c_pad)

    def pad_mat_io(w_oi):                                  # torch (out, in) -> padded (in, out)
        return jnp.pad(w_oi.T, ((0, c_pad - embed_size), (0, c_pad - embed_size)))

    # Fused highway weight/bias: [proj | gate] along the output columns.
    w_hw = jnp.concatenate([pad_mat_io(w_proj), pad_mat_io(w_gate)],
                           axis=1).astype(jnp.bfloat16)            # (c_pad, 2*c_pad)
    b_hw = jnp.concatenate([pad_vec(b_proj), pad_vec(b_gate)], axis=1)  # (1, 2*c_pad)

    return {
        # f32 originals (reference)
        "char_emb": char_emb,
        "conv_w_oik": conv_w,
        "conv_b": conv_b,
        "w_proj_io": w_proj.T,
        "b_proj": b_proj,
        "w_gate_io": w_gate.T,
        "b_gate": b_gate,
        # kernel layouts
        "char_emb_pad_bf16": char_pad,
        "conv_w_pair": cw_pair,
        "conv_b_pad": pad_vec(conv_b),
        "w_hw_pad": w_hw,
        "b_hw_pad": b_hw,
    }


# --------------------------------- main -----------------------------------------
if __name__ == "__main__":
    key = jax.random.PRNGKey(0)
    embed_size = 8          # also the conv kernel size (as the module's __init__ does)
    vocab_size = 30
    sent_len, batch, max_word_len = 4, 2, 12   # need max_word_len >= kernel_size

    k_inp, k_par = jax.random.split(key)
    inp = jax.random.randint(k_inp, (sent_len, batch, max_word_len), 0, vocab_size,
                             dtype=jnp.int32)
    params = init_params(k_par, vocab_size=vocab_size, embed_size=embed_size)

    out = model_embeddings_forward(inp, params, embed_size=embed_size)
    out = jax.block_until_ready(out)

    ref = reference_forward(inp, params, embed_size=embed_size)
    assert out.shape == (sent_len, batch, embed_size)
    assert out.dtype == jnp.float32
    # bf16 storage / MXU inputs in the kernel vs f32 reference -> loose tolerance (intentional).
    assert jnp.allclose(out, ref, atol=2e-2, rtol=2e-2), \
        f"max abs err {jnp.max(jnp.abs(out - ref))}"

    print("KERNEL_OK")
</pallas_src>

<mosaic_0001>
module attributes {stable_mosaic.version = 11 : i64} {
  func.func @char_cnn_highway_kernel(%arg0: i32, %arg1: memref<16x768xbf16, #tpu.memory_space<vmem>>, %arg2: memref<576x256xbf16, #tpu.memory_space<vmem>>, %arg3: memref<1x128xf32, #tpu.memory_space<vmem>>, %arg4: memref<128x256xbf16, #tpu.memory_space<vmem>>, %arg5: memref<1x256xf32, #tpu.memory_space<vmem>>, %arg6: memref<16x128xf32, #tpu.memory_space<vmem>>) attributes {dimension_semantics = [#tpu.dimension_semantics<parallel>], iteration_bounds = array<i64: 1>, scalar_prefetch = 0 : i64, scratch_operands = 0 : i64, tpu.core_type = #tpu.core_type<tc>, window_params = [{transform_indices = @transform_0, window_bounds = array<i64: 16, 768>}, {pipeline_mode = #tpu.pipeline_mode<synchronous>, transform_indices = @transform_1, window_bounds = array<i64: 576, 256>}, {pipeline_mode = #tpu.pipeline_mode<synchronous>, transform_indices = @transform_2, window_bounds = array<i64: 1, 128>}, {pipeline_mode = #tpu.pipeline_mode<synchronous>, transform_indices = @transform_3, window_bounds = array<i64: 128, 256>}, {pipeline_mode = #tpu.pipeline_mode<synchronous>, transform_indices = @transform_4, window_bounds = array<i64: 1, 256>}, {transform_indices = @transform_5, window_bounds = array<i64: 16, 128>}]} {
    %c0 = arith.constant 0 : index
    %c0_0 = arith.constant 0 : index
    %0 = vector.load %arg2[%c0, %c0_0] : memref<576x256xbf16, #tpu.memory_space<vmem>>, vector<576x256xbf16>
    %c0_1 = arith.constant 0 : index
    %c0_2 = arith.constant 0 : index
    %1 = vector.load %arg1[%c0_1, %c0_2] : memref<16x768xbf16, #tpu.memory_space<vmem>>, vector<16x576xbf16>
    %cst = arith.constant dense<0.000000e+00> : vector<16x256xf32>
    %2 = tpu.matmul %1, %0, %cst {dimension_numbers = #tpu.dot_dimension_numbers<[1], [0], [0], [1], [0, 0, 1, 1], [], []>} : vector<16x576xbf16>, vector<576x256xbf16>, vector<16x256xf32> -> vector<16x256xf32>
    %3 = vector.extract_strided_slice %2 {offsets = [0, 0], sizes = [16, 128], strides = [1, 1]} : vector<16x256xf32> to vector<16x128xf32>
    %4 = vector.extract_strided_slice %2 {offsets = [0, 128], sizes = [16, 128], strides = [1, 1]} : vector<16x256xf32> to vector<16x128xf32>
    %5 = arith.maximumf %3, %4 : vector<16x128xf32>
    %c0_3 = arith.constant 0 : index
    %c128 = arith.constant 128 : index
    %6 = vector.load %arg1[%c0_3, %c128] : memref<16x768xbf16, #tpu.memory_space<vmem>>, vector<16x576xbf16>
    %cst_4 = arith.constant dense<0.000000e+00> : vector<16x256xf32>
    %7 = tpu.matmul %6, %0, %cst_4 {dimension_numbers = #tpu.dot_dimension_numbers<[1], [0], [0], [1], [0, 0, 1, 1], [], []>} : vector<16x576xbf16>, vector<576x256xbf16>, vector<16x256xf32> -> vector<16x256xf32>
    %8 = vector.extract_strided_slice %7 {offsets = [0, 0], sizes = [16, 128], strides = [1, 1]} : vector<16x256xf32> to vector<16x128xf32>
    %9 = vector.extract_strided_slice %7 {offsets = [0, 128], sizes = [16, 128], strides = [1, 1]} : vector<16x256xf32> to vector<16x128xf32>
    %10 = arith.maximumf %8, %9 : vector<16x128xf32>
    %11 = arith.maximumf %5, %10 : vector<16x128xf32>
    %c0_5 = arith.constant 0 : index
    %c256 = arith.constant 256 : index
    %12 = vector.load %arg1[%c0_5, %c256] : memref<16x768xbf16, #tpu.memory_space<vmem>>, vector<16x512xbf16>
    %c0_6 = arith.constant 0 : index
    %c0_7 = arith.constant 0 : index
    %13 = vector.load %arg2[%c0_6, %c0_7] : memref<576x256xbf16, #tpu.memory_space<vmem>>, vector<512x128xbf16>
    %cst_8 = arith.constant dense<0.000000e+00> : vector<16x128xf32>
    %14 = tpu.matmul %12, %13, %cst_8 {dimension_numbers = #tpu.dot_dimension_numbers<[1], [0], [0], [1], [0, 0, 1, 1], [], []>} : vector<16x512xbf16>, vector<512x128xbf16>, vector<16x128xf32> -> vector<16x128xf32>
    %15 = arith.maximumf %11, %14 : vector<16x128xf32>
    %c0_9 = arith.constant 0 : index
    %c0_10 = arith.constant 0 : index
    %16 = vector.load %arg3[%c0_9, %c0_10] : memref<1x128xf32, #tpu.memory_space<vmem>>, vector<1x128xf32>
    %17 = vector.broadcast %16 : vector<1x128xf32> to vector<16x128xf32>
    %18 = arith.addf %15, %17 : vector<16x128xf32>
    %cst_11 = arith.constant 0.000000e+00 : f32
    %19 = vector.broadcast %cst_11 : f32 to vector<16x128xf32>
    %20 = arith.maximumf %18, %19 : vector<16x128xf32>
    %21 = arith.truncf %20 : vector<16x128xf32> to vector<16x128xbf16>
    %c0_12 = arith.constant 0 : index
    %c0_13 = arith.constant 0 : index
    %22 = vector.load %arg4[%c0_12, %c0_13] : memref<128x256xbf16, #tpu.memory_space<vmem>>, vector<128x256xbf16>
    %cst_14 = arith.constant dense<0.000000e+00> : vector<16x256xf32>
    %23 = tpu.matmul %21, %22, %cst_14 {dimension_numbers = #tpu.dot_dimension_numbers<[1], [0], [0], [1], [0, 0, 1, 1], [], []>} : vector<16x128xbf16>, vector<128x256xbf16>, vector<16x256xf32> -> vector<16x256xf32>
    %c0_15 = arith.constant 0 : index
    %c0_16 = arith.constant 0 : index
    %24 = vector.load %arg5[%c0_15, %c0_16] : memref<1x256xf32, #tpu.memory_space<vmem>>, vector<1x256xf32>
    %25 = vector.broadcast %24 : vector<1x256xf32> to vector<16x256xf32>
    %26 = arith.addf %23, %25 : vector<16x256xf32>
    %27 = vector.extract_strided_slice %26 {offsets = [0, 0], sizes = [16, 128], strides = [1, 1]} : vector<16x256xf32> to vector<16x128xf32>
    %cst_17 = arith.constant 0.000000e+00 : f32
    %28 = vector.broadcast %cst_17 : f32 to vector<16x128xf32>
    %29 = arith.maximumf %27, %28 : vector<16x128xf32>
    %30 = vector.extract_strided_slice %26 {offsets = [0, 128], sizes = [16, 128], strides = [1, 1]} : vector<16x256xf32> to vector<16x128xf32>
    %31 = arith.negf %30 : vector<16x128xf32>
    %32 = math.exp %31 : vector<16x128xf32>
    %cst_18 = arith.constant 1.000000e+00 : f32
    %33 = vector.broadcast %cst_18 : f32 to vector<16x128xf32>
    %34 = arith.addf %33, %32 : vector<16x128xf32>
    %35 = arith.divf %33, %34 : vector<16x128xf32>
    %36 = arith.subf %29, %20 : vector<16x128xf32>
    %37 = arith.mulf %35, %36 : vector<16x128xf32>
    %38 = arith.addf %20, %37 : vector<16x128xf32>
    %c0_19 = arith.constant 0 : index
    %c0_20 = arith.constant 0 : index
    %39 = vector.load %arg6[%c0_19, %c0_20] : memref<16x128xf32, #tpu.memory_space<vmem>>, vector<16x128xf32>
    tpu.vector_store %arg6[%c0_19, %c0_20], %38 {strides = array<i32>} : memref<16x128xf32, #tpu.memory_space<vmem>>, vector<16x128xf32>,
    return
  }
  func.func @transform_0(%arg0: i32) -> (i32, i32) {
    %c0_i32 = arith.constant 0 : i32
    %c0_i32_0 = arith.constant 0 : i32
    return %arg0, %c0_i32 : i32, i32
  }
  func.func @transform_1(%arg0: i32) -> (i32, i32) {
    %c0_i32 = arith.constant 0 : i32
    %c0_i32_0 = arith.constant 0 : i32
    %c0_i32_1 = arith.constant 0 : i32
    return %c0_i32, %c0_i32_0 : i32, i32
  }
  func.func @transform_2(%arg0: i32) -> (i32, i32) {
    %c0_i32 = arith.constant 0 : i32
    %c0_i32_0 = arith.constant 0 : i32
    %c0_i32_1 = arith.constant 0 : i32
    return %c0_i32, %c0_i32_0 : i32, i32
  }
  func.func @transform_3(%arg0: i32) -> (i32, i32) {
    %c0_i32 = arith.constant 0 : i32
    %c0_i32_0 = arith.constant 0 : i32
    %c0_i32_1 = arith.constant 0 : i32
    return %c0_i32, %c0_i32_0 : i32, i32
  }
  func.func @transform_4(%arg0: i32) -> (i32, i32) {
    %c0_i32 = arith.constant 0 : i32
    %c0_i32_0 = arith.constant 0 : i32
    %c0_i32_1 = arith.constant 0 : i32
    return %c0_i32, %c0_i32_0 : i32, i32
  }
  func.func @transform_5(%arg0: i32) -> (i32, i32) {
    %c0_i32 = arith.constant 0 : i32
    %c0_i32_0 = arith.constant 0 : i32
    return %arg0, %c0_i32 : i32, i32
  }
}

</mosaic_0001>

<bundles_post_ra>
// kernel: tpu_custom_call.1
= control target key start
LH: loop header
LB: loop body
LE: loop exit
PB: predicated region body
PF: predicated region fallthrough
CT: control target
= control target key end

     0   :  { %10 = vsyncpa [#allocation3], 0  ;;  %s2033_s0 = inlined_call_operand.hbm [shape: bf16[16,768], index: 0, kind: input, shape index: {}]   ;;  %s2034_s1 = inlined_call_operand.hbm [shape: bf16[576,256], index: 1, kind: input, shape index: {}]   ;;  %s2035_s2 = inlined_call_operand.vmem [shape: f32[1,128], index: 2, kind: input, shape index: {}]   ;;  %s2036_s3 = inlined_call_operand.hbm [shape: bf16[128,256], index: 3, kind: input, shape index: {}]   ;;  %s2037_s4 = inlined_call_operand.vmem [shape: f32[1,256], index: 4, kind: input, shape index: {}]   ;;  %s2038_s5 = inlined_call_operand.hbm [shape: f32[16,128], index: 5, kind: output, shape index: {}]  }
   0x1   :  { %11 = vsyncpa [#allocation6], 0 }
   0x2   :  { %12 = vsyncpa [#allocation4], 0  ;;  %s1886_s18 = smov [#allocation5]   ;;  %s1792_s22 = scalar_lea.hbm %s2034_s1, 9216 }
   0x3   :  { %s30_s19 = sshll.u32 %s1886_s18, 4  ;;  %p1793_p0 = scmp.ne.s32.totalorder %s2034_s1, %s1792_s22  ;;  %s31_s19 = int_to_ptr.vmem [resolvable:$true] %s30_s19 }
   0x4   :  { %p1796_p1 = scmp.lt.u32.totalorder %s1792_s22, %s2034_s1 }
   0x6   :  { %p1798_p2 = pnand %p1796_p1, %p1793_p0 }
   0x8   :  { %1801 = shalt.err (!%p1798_p2)
}
   0x9   :  { %s1802_s27 = scalar_lea.vmem %s31_s19, 9216  ;;  %p1807_p4 = scmp.lt.s32.totalorder %s31_s19, %s31_s19 }
   0xa   :  { %p1803_p3 = scmp.ne.s32.totalorder %s31_s19, %s1802_s27  ;;  %p1808_p5 = scmp.lt.s32.totalorder %s1802_s27, %s1802_s27 }
   0xc   :  { %p1809_p6 = por %p1808_p5, %p1807_p4 }
   0xe   :  { %p1810_p7 = pnand %p1809_p6, %p1803_p3 }
  0x10   :  { %1813 = shalt.err (!%p1810_p7)
}
  0x11   :  { %s1887_s28 = smov 128   ;;  %s1888_s29 = smov 8  }
  0x12   :  { %36 = dma.hbm_to_vmem [thread:$0]  %s2034_s1, 9216, %s31_s19, [#allocation6], %s1887_s28, %s1887_s28, %s1888_s29  }
  0x13   :  { %s1889_s7 = smov [#allocation2]   ;;  %s1814_s11 = scalar_lea.hbm %s2033_s0, 768 }
  0x14   :  { %s18_s8 = sshll.u32 %s1889_s7, 4  ;;  %p1815_p8 = scmp.ne.s32.totalorder %s2033_s0, %s1814_s11  ;;  %s19_s8 = int_to_ptr.vmem [resolvable:$true] %s18_s8 }
  0x15   :  { %p1818_p9 = scmp.lt.u32.totalorder %s1814_s11, %s2033_s0 }
  0x17   :  { %p1820_p10 = pnand %p1818_p9, %p1815_p8 }
  0x19   :  { %1823 = shalt.err (!%p1820_p10)
}
  0x1a   :  { %s1824_s16 = scalar_lea.vmem %s19_s8, 768  ;;  %p1829_p12 = scmp.lt.s32.totalorder %s19_s8, %s19_s8 }
  0x1b   :  { %p1825_p11 = scmp.ne.s32.totalorder %s19_s8, %s1824_s16  ;;  %p1830_p13 = scmp.lt.s32.totalorder %s1824_s16, %s1824_s16 }
  0x1d   :  { %p1831_p0 = por %p1830_p13, %p1829_p12 }
  0x1f   :  { %p1832_p1 = pnand %p1831_p0, %p1825_p11 }
  0x21   :  { %1835 = shalt.err (!%p1832_p1)
}
  0x22   :  { %s1890_s1 = smov 384   ;;  %s1891_s17 = smov 24  }
  0x23   :  { %24 = dma.hbm_to_vmem [thread:$0]  %s2033_s0, 768, %s19_s8, [#allocation3], %s1890_s1, %s1890_s1, %s1891_s17  }
  0x24   :  { %s1892_s20 = smov [#allocation7]   ;;  %s1836_s24 = scalar_lea.hbm %s2036_s3, 2048 }
  0x25   :  { %s44_s21 = sshll.u32 %s1892_s20, 4  ;;  %p1837_p2 = scmp.ne.s32.totalorder %s2036_s3, %s1836_s24  ;;  %s45_s21 = int_to_ptr.vmem [resolvable:$true] %s44_s21 }
  0x26   :  { %p1840_p3 = scmp.lt.u32.totalorder %s1836_s24, %s2036_s3 }
  0x28   :  { %p1842_p4 = pnand %p1840_p3, %p1837_p2 }
  0x2a   :  { %1845 = shalt.err (!%p1842_p4)
}
  0x2b   :  { %s1846_s6 = scalar_lea.vmem %s45_s21, 2048  ;;  %p1851_p6 = scmp.lt.s32.totalorder %s45_s21, %s45_s21 }
  0x2c   :  { %p1847_p5 = scmp.ne.s32.totalorder %s45_s21, %s1846_s6  ;;  %p1852_p7 = scmp.lt.s32.totalorder %s1846_s6, %s1846_s6 }
  0x2e   :  { %p1853_p8 = por %p1852_p7, %p1851_p6 }
  0x30   :  { %p1854_p9 = pnand %p1853_p8, %p1847_p5 }
  0x32   :  { %1857 = shalt.err (!%p1854_p9)
}
  0x33   :  { %50 = dma.hbm_to_vmem [thread:$0]  %s2036_s3, 2048, %s45_s21, [#allocation6], %s1887_s28, %s1887_s28, %s1888_s29  }
  0x34   :  { %1880 = dma.done.wait [#allocation3], 768  }
  0x35   :  { %1881 = vsyncadd [#allocation3], 4294966528 }
  0x36   :  { %1882 = dma.done.wait [#allocation6], 11264  }
  0x37   :  { %1883 = vsyncadd [#allocation6], 4294956032  ;;  %v1893_v0 = vmov 0   ;;  %v1603_v1 = vld [vmem:[#allocation5 + $0x4] ss:$8 sps:$4 sm:$0xff]   ;;  %vm526_vm0 = vcmask 523264  }
  0x38   :  { %648 = vmatprep.mubr.bf16.mxu1 %v1893_v0  ;;  %v1968_v2 = vld [vmem:[#allocation5 + $0x204] ss:$8 sps:$4 sm:$0xff]   ;;  %530 = vmatprep.subr.bf16.mxu0 %v1603_v1  ;;  %v1607_v3 = vld [vmem:[#allocation5] ss:$8 sps:$4 sm:$0xff]   ;;  %v1609_v5 = vld [vmem:[#allocation5 + $0x14] ss:$8 sps:$4 sm:$0xff]  }
  0x39   :  { %v1970_v4 = vld [vmem:[#allocation5 + $0x200] ss:$8 sps:$4 sm:$0xff]   ;;  %616 = vmatprep.subr.bf16.mxu1 %v1968_v2  ;;  %531 = vmatpush1.bf16.msra.mxu0 %v1607_v3  ;;  %v1974_v6 = vld [vmem:[#allocation5 + $0x214] ss:$8 sps:$4 sm:$0xff]   ;;  %v1613_v7 = vld [vmem:[#allocation5 + $0x10] ss:$8 sps:$4 sm:$0xff]  }
  0x3a   :  { %617 = vmatpush1.bf16.msra.mxu1 %v1970_v4  ;;  %532 = vmatprep.subr.bf16.mxu0 %v1609_v5  ;;  %v1976_v8 = vld [vmem:[#allocation5 + $0x210] ss:$8 sps:$4 sm:$0xff]   ;;  %v1615_v9 = vld [vmem:[#allocation5 + $0x24] ss:$8 sps:$4 sm:$0xff]   ;;  %v1619_v11 = vld [vmem:[#allocation5 + $0x20] ss:$8 sps:$4 sm:$0xff]  }
  0x3b   :  { %618 = vmatprep.subr.bf16.mxu1 %v1974_v6  ;;  %v1979_v10 = vld [vmem:[#allocation5 + $0x224] ss:$8 sps:$4 sm:$0xff]   ;;  %v1981_v12 = vld [vmem:[#allocation5 + $0x220] ss:$8 sps:$4 sm:$0xff]   ;;  %v1621_v13 = vld [vmem:[#allocation5 + $0x34] ss:$8 sps:$4 sm:$0xff]  }
  0x3c   :  { %v1985_v14 = vld [vmem:[#allocation5 + $0x234] ss:$8 sps:$4 sm:$0xff]   ;;  %v1625_v15 = vld [vmem:[#allocation5 + $0x30] ss:$8 sps:$4 sm:$0xff]   ;;  %v1627_v17 = vld [vmem:[#allocation5 + $0x44] ss:$8 sps:$4 sm:$0xff]  }
  0x3d   :  { %533 = vmatpush1.bf16.msra.mxu0 %v1613_v7  ;;  %v1988_v16 = vld [vmem:[#allocation5 + $0x230] ss:$8 sps:$4 sm:$0xff]   ;;  %v1630_v19 = vld [vmem:[#allocation5 + $0x40] ss:$8 sps:$4 sm:$0xff]   ;;  %v1631_v20 = vld [vmem:[#allocation5 + $0x54] ss:$8 sps:$4 sm:$0xff]  }
  0x3e   :  { %619 = vmatpush1.bf16.msra.mxu1 %v1976_v8  ;;  %534 = vmatprep.subr.bf16.mxu0 %v1615_v9  ;;  %v1629_v18 = vld [vmem:[#allocation2 + $0x10] ss:$24 sps:$4 sm:$0xff]   ;;  %v1634_v22 = vld [vmem:[#allocation5 + $0x64] ss:$8 sps:$4 sm:$0xff]   ;;  %v1637_v24 = vld [vmem:[#allocation5 + $0x74] ss:$8 sps:$4 sm:$0xff]  }
  0x3f   :  { %620 = vmatprep.subr.bf16.mxu1 %v1979_v10  ;;  %v1633_v21 = vld [vmem:[#allocation5 + $0x50] ss:$8 sps:$4 sm:$0xff]   ;;  %v1636_v23 = vld [vmem:[#allocation5 + $0x60] ss:$8 sps:$4 sm:$0xff]   ;;  %v1666_v26 = vld [vmem:[#allocation2 + $0x4] ss:$24 sps:$4 sm:$0xff]  }
  0x40   :  { %v1639_v25 = vld [vmem:[#allocation5 + $0x70] ss:$8 sps:$4 sm:$0xff]   ;;  %v1640_v27 = vld [vmem:[#allocation5 + $0x84] ss:$8 sps:$4 sm:$0xff]   ;;  %562 = vmatprep.mubr.bf16.mxu0 %v1666_v26  ;;  %v1642_v28 = vld [vmem:[#allocation5 + $0x80] ss:$8 sps:$4 sm:$0xff]  }
  0x41   :  { %535 = vmatpush1.bf16.msra.mxu0 %v1619_v11  ;;  %v1643_v29 = vld [vmem:[#allocation5 + $0x94] ss:$8 sps:$4 sm:$0xff]   ;;  %v1645_v30 = vld [vmem:[#allocation5 + $0x90] ss:$8 sps:$4 sm:$0xff]   ;;  %v1646_v32 = vld [vmem:[#allocation5 + $0xa4] ss:$8 sps:$4 sm:$0xff]  }
  0x42   :  { %621 = vmatpush1.bf16.msra.mxu1 %v1981_v12  ;;  %536 = vmatprep.subr.bf16.mxu0 %v1621_v13  ;;  %v1684_v31 = vld [vmem:[#allocation2 + $0x8] ss:$24 sps:$4 sm:$0xff]   ;;  %v1648_v33 = vld [vmem:[#allocation5 + $0xa0] ss:$8 sps:$4 sm:$0xff]   ;;  %v1649_v34 = vld [vmem:[#allocation5 + $0xb4] ss:$8 sps:$4 sm:$0xff]  }
  0x43   :  { %622 = vmatprep.subr.bf16.mxu1 %v1985_v14  ;;  %v1651_v35 = vld [vmem:[#allocation5 + $0xb0] ss:$8 sps:$4 sm:$0xff]   ;;  %v1652_v36 = vld [vmem:[#allocation5 + $0xc4] ss:$8 sps:$4 sm:$0xff]   ;;  %v1654_v37 = vld [vmem:[#allocation5 + $0xc0] ss:$8 sps:$4 sm:$0xff]  }
  0x44   :  { %v1655_v38 = vld [vmem:[#allocation5 + $0xd4] ss:$8 sps:$4 sm:$0xff]   ;;  %v1657_v39 = vld [vmem:[#allocation5 + $0xd0] ss:$8 sps:$4 sm:$0xff]   ;;  %v1658_v40 = vld [vmem:[#allocation5 + $0xe4] ss:$8 sps:$4 sm:$0xff]  }
  0x45   :  { %537 = vmatpush1.bf16.msra.mxu0 %v1625_v15  ;;  %v1660_v41 = vld [vmem:[#allocation5 + $0xe0] ss:$8 sps:$4 sm:$0xff]   ;;  %v1661_v42 = vld [vmem:[#allocation5 + $0xf4] ss:$8 sps:$4 sm:$0xff]   ;;  %v1663_v43 = vld [vmem:[#allocation5 + $0xf0] ss:$8 sps:$4 sm:$0xff]  }
  0x46   :  { %623 = vmatpush1.bf16.msra.mxu1 %v1988_v16  ;;  %538 = vmatprep.subr.bf16.mxu0 %v1627_v17  ;;  %v1669_v44 = vld [vmem:[#allocation5 + $0x104] ss:$8 sps:$4 sm:$0xff]   ;;  %v1664_v45 = vld [vmem:[#allocation2] ss:$24 sps:$4 sm:$0xff]   ;;  %v1672_v47 = vld [vmem:[#allocation5 + $0x114] ss:$8 sps:$4 sm:$0xff]  }
  0x47   :  { %695 = vmatprep.subr.bf16.mxu1 %v1603_v1  ;;  %v1667_v46 = vld [vmem:[#allocation5 + $0x100] ss:$8 sps:$4 sm:$0xff]   ;;  %v1993_v48 = vld [vmem:[#allocation2 + $0xc] ss:$24 sps:$4 sm:$0xff]   ;;  %v1670_v49 = vld [vmem:[#allocation5 + $0x110] ss:$8 sps:$4 sm:$0xff]  }
  0x48   :  { %v1675_v50 = vld [vmem:[#allocation5 + $0x124] ss:$8 sps:$4 sm:$0xff]   ;;  %v1673_v51 = vld [vmem:[#allocation5 + $0x120] ss:$8 sps:$4 sm:$0xff]   ;;  %v1678_v52 = vld [vmem:[#allocation5 + $0x134] ss:$8 sps:$4 sm:$0xff]  }
  0x49   :  { %1472 = vmatmul.mubr.msk.bf16.vlgmr.msra.gmra.mrb[0].mxu1 %vm526_vm0, %v1629_v18  ;;  %539 = vmatpush1.bf16.msra.mxu0 %v1630_v19  ;;  %v1676_v53 = vld [vmem:[#allocation5 + $0x130] ss:$8 sps:$4 sm:$0xff]   ;;  %v1681_v54 = vld [vmem:[#allocation5 + $0x144] ss:$8 sps:$4 sm:$0xff]   ;;  %v1679_v56 = vld [vmem:[#allocation5 + $0x140] ss:$8 sps:$4 sm:$0xff]  }
  0x4a   :  { %696 = vmatpush1.bf16.msra.mxu1 %v1607_v3  ;;  %540 = vmatprep.subr.bf16.mxu0 %v1631_v20  ;;  %v1682_v55 = vld [vmem:[#allocation2 + $0x4] ss:$24 sps:$4 sm:$0xff]   ;;  %v1723_v58 = vld [vmem:[#allocation2 + $0x10] ss:$24 sps:$4 sm:$0xff]  }
  0x4b   :  { %697 = vmatprep.subr.bf16.mxu1 %v1609_v5  ;;  %727 = vmatprep.mubr.bf16.mxu1 %v1684_v31  ;;  %v1687_v57 = vld [vmem:[#allocation5 + $0x154] ss:$8 sps:$4 sm:$0xff]   ;;  %v1685_v59 = vld [vmem:[#allocation5 + $0x150] ss:$8 sps:$4 sm:$0xff]   ;;  %v1690_v60 = vld [vmem:[#allocation5 + $0x164] ss:$8 sps:$4 sm:$0xff]  }
  0x4c   :  { %v1688_v61 = vld [vmem:[#allocation5 + $0x160] ss:$8 sps:$4 sm:$0xff]   ;;  %v1693_v62 = vld [vmem:[#allocation5 + $0x174] ss:$8 sps:$4 sm:$0xff]   ;;  %v1691_v63 = vld [vmem:[#allocation5 + $0x170] ss:$8 sps:$4 sm:$0xff]  }
  0x4d   :  { %541 = vmatpush1.bf16.msra.mxu0 %v1633_v21  ;;  %v1696_v1 = vld [vmem:[#allocation5 + $0x184] ss:$8 sps:$4 sm:$0xff]   ;;  %v1694_v3 = vld [vmem:[#allocation5 + $0x180] ss:$8 sps:$4 sm:$0xff]   ;;  %v1699_v5 = vld [vmem:[#allocation5 + $0x194] ss:$8 sps:$4 sm:$0xff]  }
  0x4e   :  { %698 = vmatpush1.bf16.msra.mxu1 %v1613_v7  ;;  %542 = vmatprep.subr.bf16.mxu0 %v1634_v22  ;;  %v1697_v7 = vld [vmem:[#allocation5 + $0x190] ss:$8 sps:$4 sm:$0xff]   ;;  %v1706_v18 = vld [vmem:[#allocation5 + $0x1c0] ss:$8 sps:$4 sm:$0xff]  }
  0x4f   :  { %699 = vmatprep.subr.bf16.mxu1 %v1615_v9  ;;  %v1702_v9 = vld [vmem:[#allocation5 + $0x1a4] ss:$8 sps:$4 sm:$0xff]   ;;  %v1996_v26 = vld [vmem:[#allocation2 + $0x8] ss:$24 sps:$4 sm:$0xff]   ;;  %v1734_v31 = vld [vmem:[#allocation5 + $0x20] ss:$8 sps:$4 sm:$0xff]  }
  0x51   :  { %543 = vmatpush1.bf16.msra.mxu0 %v1636_v23 }
  0x52   :  { %700 = vmatpush1.bf16.msra.mxu1 %v1619_v11  ;;  %544 = vmatprep.subr.bf16.mxu0 %v1637_v24  ;;  %v1700_v11 = vld [vmem:[#allocation5 + $0x1a0] ss:$8 sps:$4 sm:$0xff]  }
  0x53   :  { %701 = vmatprep.subr.bf16.mxu1 %v1621_v13  ;;  %v1705_v13 = vld [vmem:[#allocation5 + $0x1b4] ss:$8 sps:$4 sm:$0xff]  }
  0x55   :  { %545 = vmatpush1.bf16.msra.mxu0 %v1639_v25 }
  0x56   :  { %702 = vmatpush1.bf16.msra.mxu1 %v1625_v15  ;;  %546 = vmatprep.subr.bf16.mxu0 %v1640_v27  ;;  %v1703_v15 = vld [vmem:[#allocation5 + $0x1b0] ss:$8 sps:$4 sm:$0xff]  }
  0x57   :  { %703 = vmatprep.subr.bf16.mxu1 %v1627_v17  ;;  %v1708_v17 = vld [vmem:[#allocation5 + $0x1c4] ss:$8 sps:$4 sm:$0xff]  }
  0x59   :  { %547 = vmatpush1.bf16.msra.mxu0 %v1642_v28 }
  0x5a   :  { %704 = vmatpush1.bf16.msra.mxu1 %v1630_v19  ;;  %548 = vmatprep.subr.bf16.mxu0 %v1643_v29  ;;  %v1711_v19 = vld [vmem:[#allocation5 + $0x1d4] ss:$8 sps:$4 sm:$0xff]  }
  0x5b   :  { %705 = vmatprep.subr.bf16.mxu1 %v1631_v20  ;;  %v1709_v20 = vld [vmem:[#allocation5 + $0x1d0] ss:$8 sps:$4 sm:$0xff]  }
  0x5d   :  { %549 = vmatpush1.bf16.msra.mxu0 %v1645_v30 }
  0x5e   :  { %706 = vmatpush1.bf16.msra.mxu1 %v1633_v21  ;;  %550 = vmatprep.subr.bf16.mxu0 %v1646_v32  ;;  %v1714_v21 = vld [vmem:[#allocation5 + $0x1e4] ss:$8 sps:$4 sm:$0xff]  }
  0x5f   :  { %707 = vmatprep.subr.bf16.mxu1 %v1634_v22  ;;  %v1712_v22 = vld [vmem:[#allocation5 + $0x1e0] ss:$8 sps:$4 sm:$0xff]  }
  0x61   :  { %551 = vmatpush1.bf16.msra.mxu0 %v1648_v33 }
  0x62   :  { %708 = vmatpush1.bf16.msra.mxu1 %v1636_v23  ;;  %552 = vmatprep.subr.bf16.mxu0 %v1649_v34  ;;  %v1717_v23 = vld [vmem:[#allocation5 + $0x1f4] ss:$8 sps:$4 sm:$0xff]  }
  0x63   :  { %709 = vmatprep.subr.bf16.mxu1 %v1637_v24  ;;  %v1715_v24 = vld [vmem:[#allocation5 + $0x1f0] ss:$8 sps:$4 sm:$0xff]  }
  0x65   :  { %553 = vmatpush1.bf16.msra.mxu0 %v1651_v35 }
  0x66   :  { %710 = vmatpush1.bf16.msra.mxu1 %v1639_v25  ;;  %554 = vmatprep.subr.bf16.mxu0 %v1652_v36  ;;  %v1724_v25 = vld [vmem:[#allocation5 + $0x80] ss:$8 sps:$4 sm:$0xff]  }
  0x67   :  { %711 = vmatprep.subr.bf16.mxu1 %v1640_v27  ;;  %v1725_v27 = vld [vmem:[#allocation5] ss:$8 sps:$4 sm:$0xff]  }
  0x69   :  { %555 = vmatpush1.bf16.msra.mxu0 %v1654_v37 }
  0x6a   :  { %712 = vmatpush1.bf16.msra.mxu1 %v1642_v28  ;;  %556 = vmatprep.subr.bf16.mxu0 %v1655_v38  ;;  %v1728_v28 = vld [vmem:[#allocation5 + $0x90] ss:$8 sps:$4 sm:$0xff]  }
  0x6b   :  { %713 = vmatprep.subr.bf16.mxu1 %v1643_v29  ;;  %v1730_v29 = vld [vmem:[#allocation5 + $0x10] ss:$8 sps:$4 sm:$0xff]  }
  0x6d   :  { %557 = vmatpush1.bf16.msra.mxu0 %v1657_v39 }
  0x6e   :  { %714 = vmatpush1.bf16.msra.mxu1 %v1645_v30  ;;  %558 = vmatprep.subr.bf16.mxu0 %v1658_v40  ;;  %v1732_v30 = vld [vmem:[#allocation5 + $0xa0] ss:$8 sps:$4 sm:$0xff]  }
  0x6f   :  { %715 = vmatprep.subr.bf16.mxu1 %v1646_v32  ;;  %v1736_v32 = vld [vmem:[#allocation5 + $0xb0] ss:$8 sps:$4 sm:$0xff]  }
  0x71   :  { %559 = vmatpush1.bf16.msra.mxu0 %v1660_v41 }
  0x72   :  { %716 = vmatpush1.bf16.msra.mxu1 %v1648_v33  ;;  %560 = vmatprep.subr.bf16.mxu0 %v1661_v42  ;;  %v1738_v33 = vld [vmem:[#allocation5 + $0x30] ss:$8 sps:$4 sm:$0xff]  }
  0x73   :  { %717 = vmatprep.subr.bf16.mxu1 %v1649_v34  ;;  %v1740_v34 = vld [vmem:[#allocation5 + $0xc0] ss:$8 sps:$4 sm:$0xff]  }
  0x75   :  { %561 = vmatpush1.bf16.msra.mxu0 %v1663_v43 }
  0x76   :  { %718 = vmatpush1.bf16.msra.mxu1 %v1651_v35  ;;  %573 = vmatprep.subr.bf16.mxu0 %v1669_v44  ;;  %v1721_v35 = vld [vmem:[#allocation2 + $0xc] ss:$24 sps:$4 sm:$0xff]  }
  0x77   :  { %719 = vmatprep.subr.bf16.mxu1 %v1652_v36  ;;  %v1742_v36 = vld [vmem:[#allocation5 + $0x40] ss:$8 sps:$4 sm:$0xff]  }
  0x78   :  { %563 = vmatmul.mubr.bf16.vlgmr.msra.gmra.mrb[0].mxu0 %v1664_v45  ;;  %v1743_v45 = vld [vmem:[#allocation5 + $0x1c0] ss:$8 sps:$4 sm:$0xff]  }
  0x79   :  { %574 = vmatpush1.bf16.msra.mxu0 %v1667_v46  ;;  %605 = vmatprep.mubr.bf16.mxu0 %v1993_v48 }
  0x7a   :  { %720 = vmatpush1.bf16.msra.mxu1 %v1654_v37  ;;  %575 = vmatprep.subr.bf16.mxu0 %v1672_v47  ;;  %v1744_v37 = vld [vmem:[#allocation5 + $0xd0] ss:$8 sps:$4 sm:$0xff]  }
  0x7b   :  { %721 = vmatprep.subr.bf16.mxu1 %v1655_v38  ;;  %v1746_v38 = vld [vmem:[#allocation5 + $0x50] ss:$8 sps:$4 sm:$0xff]  }
  0x7d   :  { %576 = vmatpush1.bf16.msra.mxu0 %v1670_v49 }
  0x7e   :  { %722 = vmatpush1.bf16.msra.mxu1 %v1657_v39  ;;  %577 = vmatprep.subr.bf16.mxu0 %v1675_v50  ;;  %v1748_v39 = vld [vmem:[#allocation5 + $0xe0] ss:$8 sps:$4 sm:$0xff]  }
  0x7f   :  { %723 = vmatprep.subr.bf16.mxu1 %v1658_v40  ;;  %v1752_v40 = vld [vmem:[#allocation5 + $0xf0] ss:$8 sps:$4 sm:$0xff]  }
  0x81   :  { %578 = vmatpush1.bf16.msra.mxu0 %v1673_v51 }
  0x82   :  { %724 = vmatpush1.bf16.msra.mxu1 %v1660_v41  ;;  %579 = vmatprep.subr.bf16.mxu0 %v1678_v52  ;;  %v1754_v41 = vld [vmem:[#allocation5 + $0x70] ss:$8 sps:$4 sm:$0xff]  }
  0x83   :  { %725 = vmatprep.subr.bf16.mxu1 %v1661_v42  ;;  %v1729_v42 = vld [vmem:[#allocation5 + $0x100] ss:$8 sps:$4 sm:$0xff]  }
  0x85   :  { %580 = vmatpush1.bf16.msra.mxu0 %v1676_v53 }
  0x86   :  { %726 = vmatpush1.bf16.msra.mxu1 %v1663_v43  ;;  %581 = vmatprep.subr.bf16.mxu0 %v1681_v54  ;;  %v1733_v43 = vld [vmem:[#allocation5 + $0x110] ss:$8 sps:$4 sm:$0xff]  }
  0x87   :  { %738 = vmatprep.subr.bf16.mxu1 %v1669_v44  ;;  %v1741_v44 = vld [vmem:[#allocation5 + $0x130] ss:$8 sps:$4 sm:$0xff]  }
  0x89   :  { %728 = vmatmul.mubr.bf16.vlgmr.msra.gmra.mrb[4].mxu1 %v1682_v55  ;;  %582 = vmatpush1.bf16.msra.mxu0 %v1679_v56 }
  0x8a   :  { %739 = vmatpush1.bf16.msra.mxu1 %v1667_v46  ;;  %583 = vmatprep.subr.bf16.mxu0 %v1687_v57  ;;  %v1745_v46 = vld [vmem:[#allocation5 + $0x140] ss:$8 sps:$4 sm:$0xff]  }
  0x8b   :  { %740 = vmatprep.subr.bf16.mxu1 %v1672_v47  ;;  %770 = vmatprep.mubr.bf16.mxu1 %v1723_v58  ;;  %v1747_v47 = vld [vmem:[#allocation5 + $0x1d0] ss:$8 sps:$4 sm:$0xff]   ;;  %v1762_v58 = vld [vmem:[#allocation7 + $0x4] ss:$8 sps:$4 sm:$0xff]  }
  0x8d   :  { %584 = vmatpush1.bf16.msra.mxu0 %v1685_v59 }
  0x8e   :  { %741 = vmatpush1.bf16.msra.mxu1 %v1670_v49  ;;  %585 = vmatprep.subr.bf16.mxu0 %v1690_v60  ;;  %v1751_v49 = vld [vmem:[#allocation5 + $0x1e0] ss:$8 sps:$4 sm:$0xff]  }
  0x8f   :  { %742 = vmatprep.subr.bf16.mxu1 %v1675_v50  ;;  %v1753_v50 = vld [vmem:[#allocation5 + $0x160] ss:$8 sps:$4 sm:$0xff]  }
  0x91   :  { %586 = vmatpush1.bf16.msra.mxu0 %v1688_v61 }
  0x92   :  { %743 = vmatpush1.bf16.msra.mxu1 %v1673_v51  ;;  %587 = vmatprep.subr.bf16.mxu0 %v1693_v62  ;;  %v1756_v51 = vld [vmem:[#allocation5 + $0x170] ss:$8 sps:$4 sm:$0xff]  }
  0x93   :  { %744 = vmatprep.subr.bf16.mxu1 %v1678_v52  ;;  %v1757_v52 = vld [vmem:[#allocation2 + $0x10] ss:$24 sps:$4 sm:$0xff]  }
  0x95   :  { %588 = vmatpush1.bf16.msra.mxu0 %v1691_v63 }
  0x96   :  { %745 = vmatpush1.bf16.msra.mxu1 %v1676_v53  ;;  %589 = vmatprep.subr.bf16.mxu0 %v1696_v1 }
  0x97   :  { %746 = vmatprep.subr.bf16.mxu1 %v1681_v54 }
  0x99   :  { %590 = vmatpush1.bf16.msra.mxu0 %v1694_v3 }
  0x9a   :  { %747 = vmatpush1.bf16.msra.mxu1 %v1679_v56  ;;  %591 = vmatprep.subr.bf16.mxu0 %v1699_v5 }
  0x9b   :  { %748 = vmatprep.subr.bf16.mxu1 %v1687_v57  ;;  %v1760_v57 = vld [vmem:[#allocation7] ss:$8 sps:$4 sm:$0xff]  }
  0x9d   :  { %592 = vmatpush1.bf16.msra.mxu0 %v1697_v7 }
  0x9e   :  { %749 = vmatpush1.bf16.msra.mxu1 %v1685_v59  ;;  %593 = vmatprep.subr.bf16.mxu0 %v1702_v9  ;;  %v1765_v59 = vld [vmem:[#allocation7 + $0x14] ss:$8 sps:$4 sm:$0xff]  }
  0x9f   :  { %750 = vmatprep.subr.bf16.mxu1 %v1690_v60  ;;  %v1763_v60 = vld [vmem:[#allocation7 + $0x10] ss:$8 sps:$4 sm:$0xff]  }
  0xa1   :  { %594 = vmatpush1.bf16.msra.mxu0 %v1700_v11 }
  0xa2   :  { %751 = vmatpush1.bf16.msra.mxu1 %v1688_v61  ;;  %595 = vmatprep.subr.bf16.mxu0 %v1705_v13  ;;  %v1768_v61 = vld [vmem:[#allocation7 + $0x24] ss:$8 sps:$4 sm:$0xff]  }
  0xa3   :  { %752 = vmatprep.subr.bf16.mxu1 %v1693_v62  ;;  %v1766_v62 = vld [vmem:[#allocation7 + $0x20] ss:$8 sps:$4 sm:$0xff]  }
  0xa5   :  { %596 = vmatpush1.bf16.msra.mxu0 %v1703_v15 }
  0xa6   :  { %753 = vmatpush1.bf16.msra.mxu1 %v1691_v63  ;;  %597 = vmatprep.subr.bf16.mxu0 %v1708_v17  ;;  %v1771_v63 = vld [vmem:[#allocation7 + $0x34] ss:$8 sps:$4 sm:$0xff]  }
  0xa7   :  { %754 = vmatprep.subr.bf16.mxu1 %v1696_v1  ;;  %v1769_v1 = vld [vmem:[#allocation7 + $0x30] ss:$8 sps:$4 sm:$0xff]  }
  0xa9   :  { %598 = vmatpush1.bf16.msra.mxu0 %v1706_v18 }
  0xaa   :  { %755 = vmatpush1.bf16.msra.mxu1 %v1694_v3  ;;  %599 = vmatprep.subr.bf16.mxu0 %v1711_v19  ;;  %v1774_v3 = vld [vmem:[#allocation7 + $0x44] ss:$8 sps:$4 sm:$0xff]  }
  0xab   :  { %756 = vmatprep.subr.bf16.mxu1 %v1699_v5  ;;  %v1772_v5 = vld [vmem:[#allocation7 + $0x40] ss:$8 sps:$4 sm:$0xff]  }
  0xad   :  { %600 = vmatpush1.bf16.msra.mxu0 %v1709_v20 }
  0xae   :  { %757 = vmatpush1.bf16.msra.mxu1 %v1697_v7  ;;  %601 = vmatprep.subr.bf16.mxu0 %v1714_v21  ;;  %v1777_v7 = vld [vmem:[#allocation7 + $0x54] ss:$8 sps:$4 sm:$0xff]  }
  0xaf   :  { %758 = vmatprep.subr.bf16.mxu1 %v1702_v9  ;;  %v1775_v9 = vld [vmem:[#allocation7 + $0x50] ss:$8 sps:$4 sm:$0xff]  }
  0xb1   :  { %602 = vmatpush1.bf16.msra.mxu0 %v1712_v22 }
  0xb2   :  { %759 = vmatpush1.bf16.msra.mxu1 %v1700_v11  ;;  %603 = vmatprep.subr.bf16.mxu0 %v1717_v23  ;;  %v1780_v11 = vld [vmem:[#allocation7 + $0x64] ss:$8 sps:$4 sm:$0xff]  }
  0xb3   :  { %760 = vmatprep.subr.bf16.mxu1 %v1705_v13  ;;  %v1778_v13 = vld [vmem:[#allocation7 + $0x60] ss:$8 sps:$4 sm:$0xff]  }
  0xb5   :  { %604 = vmatpush1.bf16.msra.mxu0 %v1715_v24 }
  0xb6   :  { %761 = vmatpush1.bf16.msra.mxu1 %v1703_v15  ;;  %1534 = vmatprep.subr.bf16.mxu0 %v1724_v25  ;;  %v1783_v15 = vld [vmem:[#allocation7 + $0x74] ss:$8 sps:$4 sm:$0xff]  }
  0xb7   :  { %762 = vmatprep.subr.bf16.mxu1 %v1708_v17  ;;  %v1781_v17 = vld [vmem:[#allocation7 + $0x70] ss:$8 sps:$4 sm:$0xff]  }
  0xb8   :  { %606 = vmatmul.mubr.bf16.vlgmr.msra.gmra.mrb[0].mxu0 %v1996_v26 }
  0xb9   :  { %1535 = vmatpush3.bf16.msra.mxu0 %v1725_v27  ;;  %1140 = vmatprep.mubr.bf16.mxu0 %v1993_v48  ;;  %v1749_v48 = vld [vmem:[#allocation5 + $0x150] ss:$8 sps:$4 sm:$0xff]  }
  0xba   :  { %763 = vmatpush1.bf16.msra.mxu1 %v1706_v18  ;;  %1536 = vmatprep.subr.bf16.mxu0 %v1728_v28 }
  0xbb   :  { %764 = vmatprep.subr.bf16.mxu1 %v1711_v19 }
  0xbd   :  { %1537 = vmatpush3.bf16.msra.mxu0 %v1730_v29 }
  0xbe   :  { %765 = vmatpush1.bf16.msra.mxu1 %v1709_v20  ;;  %1538 = vmatprep.subr.bf16.mxu0 %v1732_v30 }
  0xbf   :  { %766 = vmatprep.subr.bf16.mxu1 %v1714_v21 }
  0xc1   :  { %1539 = vmatpush3.bf16.msra.mxu0 %v1734_v31 }
  0xc2   :  { %767 = vmatpush1.bf16.msra.mxu1 %v1712_v22  ;;  %1540 = vmatprep.subr.bf16.mxu0 %v1736_v32 }
  0xc3   :  { %768 = vmatprep.subr.bf16.mxu1 %v1717_v23 }
  0xc5   :  { %1541 = vmatpush3.bf16.msra.mxu0 %v1738_v33 }
  0xc6   :  { %769 = vmatpush1.bf16.msra.mxu1 %v1715_v24  ;;  %1542 = vmatprep.subr.bf16.mxu0 %v1740_v34 }
  0xc7   :  { %781 = vmatprep.subr.bf16.mxu1 %v1968_v2  ;;  %v1750_v2 = vld [vmem:[#allocation5 + $0x60] ss:$8 sps:$4 sm:$0xff]  }
  0xc9   :  { %771 = vmatmul.mubr.bf16.vlgmr.msra.gmra.mrb[4].mxu1 %v1721_v35  ;;  %1543 = vmatpush3.bf16.msra.mxu0 %v1742_v36 }
  0xca   :  { %782 = vmatpush1.bf16.msra.mxu1 %v1970_v4  ;;  %813 = vmatprep.mubr.bf16.mxu1 %v1893_v0  ;;  %v1727_v4 = vld [vmem:[#allocation5 + $0x180] ss:$8 sps:$4 sm:$0xff]  }
  0xcb   :  { %783 = vmatprep.subr.bf16.mxu1 %v1974_v6  ;;  %1544 = vmatprep.subr.bf16.mxu0 %v1744_v37  ;;  %v1726_v6 = vld [vmem:[#allocation2 + $0x14] ss:$24 sps:$4 sm:$0xff]  }
  0xcd   :  { %1545 = vmatpush3.bf16.msra.mxu0 %v1746_v38 }
  0xce   :  { %784 = vmatpush1.bf16.msra.mxu1 %v1976_v8  ;;  %1546 = vmatprep.subr.bf16.mxu0 %v1748_v39  ;;  %v1731_v8 = vld [vmem:[#allocation5 + $0x190] ss:$8 sps:$4 sm:$0xff]  }
  0xcf   :  { %785 = vmatprep.subr.bf16.mxu1 %v1979_v10  ;;  %v1759_v10 = vld [vmem:[#allocation2 + $0x14] ss:$24 sps:$4 sm:$0xff]  }
  0xd1   :  { %1547 = vmatpush3.bf16.msra.mxu0 %v1750_v2 }
  0xd2   :  { %786 = vmatpush1.bf16.msra.mxu1 %v1981_v12  ;;  %1548 = vmatprep.subr.bf16.mxu0 %v1752_v40  ;;  %v1735_v12 = vld [vmem:[#allocation5 + $0x1a0] ss:$8 sps:$4 sm:$0xff]  }
  0xd3   :  { %787 = vmatprep.subr.bf16.mxu1 %v1985_v14  ;;  %v1737_v14 = vld [vmem:[#allocation5 + $0x120] ss:$8 sps:$4 sm:$0xff]  }
  0xd5   :  { %1549 = vmatpush3.bf16.msra.mxu0 %v1754_v41 }
  0xd6   :  { %788 = vmatpush1.bf16.msra.mxu1 %v1988_v16  ;;  %v1739_v16 = vld [vmem:[#allocation5 + $0x1b0] ss:$8 sps:$4 sm:$0xff]   ;;  %1312 = vmatprep.subr.bf16.mxu0 %v1762_v58 }
  0xd7   :  { %1556 = vmatprep.subr.bf16.mxu1 %v1727_v4 }
  0xd8   :  { %1141 = vmatmul.mubr.bf16.vlgmr.msra.gmra.mrb[4].mxu0 %v1996_v26 }
  0xd9   :  { %1478 = vmatmul.mubr.msk.bf16.vlgmr.msra.gmra.mrb[4].mxu1 %vm526_vm0, %v1726_v6  ;;  %1344 = vmatprep.mubr.bf16.mxu0 %v1893_v0  ;;  %v1755_v0 = vld [vmem:[#allocation5 + $0x1f0] ss:$8 sps:$4 sm:$0xff]  }
  0xda   :  { %1557 = vmatpush3.bf16.msra.mxu1 %v1729_v42  ;;  %1181 = vmatprep.mubr.bf16.mxu1 %v1759_v10 }
  0xdb   :  { %1558 = vmatprep.subr.bf16.mxu1 %v1731_v8  ;;  %1313 = vmatpush1.bf16.msra.mxu0 %v1760_v57 }
  0xdc   :  { %1314 = vmatprep.subr.bf16.mxu0 %v1765_v59 }
  0xde   :  { %1559 = vmatpush3.bf16.msra.mxu1 %v1733_v43 }
  0xdf   :  { %1560 = vmatprep.subr.bf16.mxu1 %v1735_v12  ;;  %1315 = vmatpush1.bf16.msra.mxu0 %v1763_v60  ;;  %v1515_v12 = vld [vmem:[%s2035_s2] ss:$0 sm:$0xff]  ;;  %s1894_s2 = smov [#allocation8]  }
  0xe0   :  { %1316 = vmatprep.subr.bf16.mxu0 %v1768_v61 }
  0xe2   :  { %1561 = vmatpush3.bf16.msra.mxu1 %v1737_v14 }
  0xe3   :  { %1562 = vmatprep.subr.bf16.mxu1 %v1739_v16  ;;  %1317 = vmatpush1.bf16.msra.mxu0 %v1766_v62 }
  0xe4   :  { %1318 = vmatprep.subr.bf16.mxu0 %v1771_v63 }
  0xe6   :  { %1563 = vmatpush3.bf16.msra.mxu1 %v1741_v44 }
  0xe7   :  { %1564 = vmatprep.subr.bf16.mxu1 %v1743_v45  ;;  %1319 = vmatpush1.bf16.msra.mxu0 %v1769_v1 }
  0xe8   :  { %1320 = vmatprep.subr.bf16.mxu0 %v1774_v3 }
  0xea   :  { %1565 = vmatpush3.bf16.msra.mxu1 %v1745_v46 }
  0xeb   :  { %1566 = vmatprep.subr.bf16.mxu1 %v1747_v47  ;;  %1321 = vmatpush1.bf16.msra.mxu0 %v1772_v5 }
  0xec   :  { %1322 = vmatprep.subr.bf16.mxu0 %v1777_v7 }
  0xee   :  { %1567 = vmatpush3.bf16.msra.mxu1 %v1749_v48 }
  0xef   :  { %1568 = vmatprep.subr.bf16.mxu1 %v1751_v49  ;;  %1323 = vmatpush1.bf16.msra.mxu0 %v1775_v9 }
  0xf0   :  { %1324 = vmatprep.subr.bf16.mxu0 %v1780_v11 }
  0xf2   :  { %1569 = vmatpush3.bf16.msra.mxu1 %v1753_v50  ;;  %v1222_v50 = vlaneseq }
  0xf3   :  { %1570 = vmatprep.subr.bf16.mxu1 %v1755_v0  ;;  %1325 = vmatpush1.bf16.msra.mxu0 %v1778_v13 }
  0xf4   :  { %1326 = vmatprep.subr.bf16.mxu0 %v1783_v15  ;;  %v1223_v0 = vshrl.u32 %v1222_v50, 7 }
  0xf6   :  { %1571 = vmatpush3.bf16.msra.mxu1 %v1756_v51  ;;  %v1228_v51 = vsub.s32 1, %v1223_v0  ;;  %v1224_v62 = vsub.s32 0, %v1223_v0 }
  0xf7   :  { %1327 = vmatpush1.bf16.msra.mxu0 %v1781_v17 }
  0xf9   :  { %1182 = vmatmul.mubr.bf16.vlgmr.msra.gmra.mrb[8].mxu1 %v1757_v52  ;;  %v1220_v52 = vld [vmem:[%s2037_s4] sm:$0x3]  ;;  %s1382_s4 = sshll.u32 %s1894_s2, 4  ;;  %s1383_s4 = int_to_ptr.vmem [resolvable:$true] %s1382_s4 }
  0xfa   :  { %v1225_v1 = vrot.slane %v1220_v52, %v1224_v62  ;;  %s1858_s11 = scalar_lea.vmem %s1383_s4, 256  ;;  %p1863_p11 = scmp.lt.s32.totalorder %s1383_s4, %s1383_s4 }
  0xfb   :  { %p1859_p10 = scmp.ne.s32.totalorder %s1383_s4, %s1858_s11  ;;  %p1864_p12 = scmp.lt.s32.totalorder %s1858_s11, %s1858_s11 }
  0xfd   :  { %p1865_p13 = por %p1864_p12, %p1863_p11 }
  0xff   :  { %p1866_p0 = pnand %p1865_p13, %p1859_p10 }
 0x11c   :  { %v650_v53 = vpop.f32.mrb[0].mxu1 }
 0x11d   :  { %v652_v54 = vpop.f32.mrb[1].mxu1 }
 0x11e   :  { %v654_v55 = vpop.f32.mrb[2].mxu1 }
 0x11f   :  { %v656_v56 = vpop.f32.mrb[3].mxu1 }
 0x18b   :  { %v607_v18 = vpop.f32.mrb[0].mxu0 }
 0x18c   :  { %v1578_v19 = vadd.f32 %v650_v53, %v607_v18  ;;  %v609_v20 = vpop.f32.mrb[1].mxu0  ;;  %v1229_v53 = vrot.slane %v1220_v52, %v1228_v51 }
 0x18d   :  { %v1579_v21 = vadd.f32 %v652_v54, %v609_v20  ;;  %v611_v22 = vpop.f32.mrb[2].mxu0 }
 0x18e   :  { %v1580_v23 = vadd.f32 %v654_v55, %v611_v22  ;;  %v613_v24 = vpop.f32.mrb[3].mxu0 }
 0x18f   :  { %v659_v25 = vmax.f32 %v1578_v19, %v1579_v21  ;;  %v1581_v26 = vadd.f32 %v656_v56, %v613_v24 }
 0x191   :  { %v660_v27 = vmax.f32 %v1580_v23, %v1581_v26 }
 0x1ab   :  { %v1550_v30 = vpop.f32.mrb[4].mxu0 }
 0x1ac   :  { %v815_v28 = vpop.f32.mrb[4].mxu1  ;;  %v1551_v33 = vpop.f32.mrb[5].mxu0 }
 0x1ad   :  { %v817_v29 = vpop.f32.mrb[5].mxu1  ;;  %v1552_v35 = vadd.f32 %v1551_v33, %v1550_v30  ;;  %v1553_v36 = vpop.f32.mrb[6].mxu0 }
 0x1ae   :  { %v824_v31 = vmax.f32 %v815_v28, %v817_v29  ;;  %v819_v32 = vpop.f32.mrb[6].mxu1  ;;  %v1554_v39 = vpop.f32.mrb[7].mxu0 }
 0x1af   :  { %v821_v34 = vpop.f32.mrb[7].mxu1  ;;  %v1555_v2 = vadd.f32 %v1554_v39, %v1553_v36 }
 0x1b0   :  { %v826_v37 = vmax.f32 %v659_v25, %v824_v31  ;;  %v825_v38 = vmax.f32 %v819_v32, %v821_v34 }
 0x1b2   :  { %v827_v40 = vmax.f32 %v660_v27, %v825_v38 }
 0x1cc   :  { %v1572_v4 = vpop.f32.mrb[8].mxu1 }
 0x1cd   :  { %v1573_v41 = vpop.f32.mrb[9].mxu1 }
 0x1ce   :  { %v1574_v6 = vadd.f32 %v1573_v41, %v1572_v4  ;;  %v1575_v42 = vpop.f32.mrb[10].mxu1 }
 0x1cf   :  { %v1576_v8 = vpop.f32.mrb[11].mxu1 }
 0x1d0   :  { %v1184_v10 = vadd.f32 %v1574_v6, %v1552_v35  ;;  %v1577_v43 = vadd.f32 %v1576_v8, %v1575_v42 }
 0x1d2   :  { %v1190_v14 = vmax.f32 %v826_v37, %v1184_v10  ;;  %v1187_v16 = vadd.f32 %v1577_v43, %v1555_v2 }
 0x1d4   :  { %v1199_v44 = vadd.f32 %v1515_v12, %v1190_v14  ;;  %v1191_v45 = vmax.f32 %v827_v40, %v1187_v16 }
 0x1d6   :  { %v1200_v46 = vadd.f32 %v1515_v12, %v1191_v45  ;;  %v1201_v47 = vmax.f32 %v1199_v44, 0.0 }
 0x1d8   :  { %v1202_v48 = vmax.f32 %v1200_v46, 0.0 }
 0x1da   :  { %v1203_v49 = vpack.c.bf16 %v1202_v48, %v1201_v47 }
 0x1dc   :  { %1345 = vmatmul.mubr.bf16.vlgmr.msra.gmra.mrb[8].mxu0 %v1203_v49 }
 0x2af   :  { %v1346_v54 = vpop.f32.mrb[8].mxu0 }
 0x2b0   :  { %v1348_v55 = vpop.f32.mrb[9].mxu0  ;;  %v1347_v9 = vadd.f32 %v1346_v54, %v1225_v1 }
 0x2b1   :  { %v1349_v56 = vadd.f32 %v1348_v55, %v1229_v53  ;;  %v1350_v57 = vpop.f32.mrb[10].mxu0 }
 0x2b2   :  { %v1352_v58 = vpop.f32.mrb[11].mxu0  ;;  %v1351_v11 = vadd.f32 %v1350_v57, %v1225_v1  ;;  %v1355_v13 = vmax.f32 %v1347_v9, 0.0 }
 0x2b3   :  { %v1532_v59 = vmul.f32 -1.442695, %v1349_v56  ;;  %v1353_v60 = vadd.f32 %v1352_v58, %v1229_v53 }
 0x2b4   :  { %v1356_v15 = vmax.f32 %v1351_v11, 0.0  ;;  %v1369_v17 = vsub.f32 %v1355_v13, %v1201_v47 }
 0x2b5   :  { %1784 = vpow2.f32 %v1532_v59  ;;  %v1533_v61 = vmul.f32 -1.442695, %v1353_v60 }
 0x2b6   :  { %v1370_v19 = vsub.f32 %v1356_v15, %v1202_v48 }
 0x2b7   :  { %1786 = vpow2.f32 %v1533_v61 }
 0x2bf   :  { %v1785_v63 = vpop.eup %1784 }
 0x2c0   :  { %v1363_v3 = vadd.f32 1.0, %v1785_v63 }
 0x2c1   :  { %v1787_v5 = vpop.eup %1786 }
 0x2c2   :  { %1788 = vrcp.f32 %v1363_v3  ;;  %v1364_v7 = vadd.f32 1.0, %v1787_v5 }
 0x2c4   :  { %1790 = vrcp.f32 %v1364_v7 }
 0x2cc   :  { %v1789_v18 = vpop.eup %1788 }
 0x2cd   :  { %v1371_v20 = vmul.f32 %v1789_v18, %v1369_v17 }
 0x2ce   :  { %v1791_v21 = vpop.eup %1790 }
 0x2cf   :  { %v1372_v22 = vmul.f32 %v1791_v21, %v1370_v19  ;;  %v1373_v23 = vadd.f32 %v1371_v20, %v1201_v47 }
 0x2d1   :  { %v1374_v24 = vadd.f32 %v1372_v22, %v1202_v48  ;;  %1375 = vst [vmem:[#allocation8] sm:$0xff] %v1373_v23 }
 0x2d3   :  { %1376 = vst [vmem:[#allocation8 + $0x8] sm:$0xff] %v1374_v24 }
 0x2d4   :  { %1869 = shalt.err (!%p1866_p0)
}
 0x2d5   :  { %s1870_s14 = scalar_lea.hbm %s2038_s5, 256 }
 0x2d6   :  { %p1871_p1 = scmp.ne.s32.totalorder %s2038_s5, %s1870_s14  ;;  %p1874_p2 = scmp.lt.u32.totalorder %s1870_s14, %s2038_s5 }
 0x2d8   :  { %p1876_p3 = pnand %p1874_p2, %p1871_p1 }
 0x2da   :  { %1879 = shalt.err (!%p1876_p3)
}
 0x2db   :  { %1388 = dma.vmem_to_hbm [thread:$0]  %s1383_s4, 256, %s2038_s5, [#allocation4], %s1887_s28, %s1887_s28, %s1888_s29  }
 0x2dc   :  { %1884 = dma.done.wait [#allocation4], 256  }
 0x2dd   :  { %1885 = vsyncadd [#allocation4], 4294967040 }
 0x2de   :  { %1392 = vsyncpa [#allocation3], 1 }
 0x2df   :  { %1393 = vsyncpa [#allocation6], 1 }
 0x2e0   :  { %1394 = vsyncpa [#allocation4], 1 }

</bundles_post_ra>
